<compile_context>
chip_gen: v7x
topology: tpu7x:2x2x1
jax: 0.10.0
libtpu: 0.0.40
codegen_flags: <defaults>
</compile_context>

<pallas_src>
import functools

import jax
import jax.numpy as jnp
from jax.experimental import pallas as pl
from jax.experimental.pallas import tpu as pltpu


def _round_up(x, m):
    return (x + m - 1) // m * m


# ---------------------------------------------------------------------------
# Kernels
# ---------------------------------------------------------------------------

def _ffw_resident_kernel(x_ref, w1_ref, b1_ref, w2_ref, b2_ref, o_ref):
    """One (TM, Cp) token tile; both weight slabs VMEM-resident.

    bf16 MXU operands, f32 accumulation; bias + ReLU on the VPU (free filler
    under the MXU, so deliberately kept in-kernel)."""
    x = x_ref[...].astype(jnp.bfloat16)            # no-op if already bf16
    h = jnp.dot(x, w1_ref[...], preferred_element_type=jnp.float32)
    h = jnp.maximum(h + b1_ref[...], 0.0)
    y = jnp.dot(h.astype(jnp.bfloat16), w2_ref[...],
                preferred_element_type=jnp.float32)
    o_ref[...] = (y + b2_ref[...]).astype(o_ref.dtype)   # Dropout(p=0) == identity


def _ffw_htiled_kernel(x_ref, w1_ref, b1_ref, w2_ref, b2_ref, o_ref, acc_ref):
    """Hidden-dim tiled path: grid = (M tiles, H tiles).

    ReLU is elementwise over the hidden dim, so each hidden tile's contribution
    ReLU(x @ W1[:, k] + b1[k]) @ W2[k, :] accumulates exactly into a resident
    f32 (TM, Cp) scratch accumulator."""
    k = pl.program_id(1)

    @pl.when(k == 0)
    def _():
        acc_ref[...] = jnp.broadcast_to(b2_ref[...], acc_ref.shape)

    x = x_ref[...].astype(jnp.bfloat16)
    h = jnp.dot(x, w1_ref[...], preferred_element_type=jnp.float32)
    h = jnp.maximum(h + b1_ref[...], 0.0)
    acc_ref[...] += jnp.dot(h.astype(jnp.bfloat16), w2_ref[...],
                            preferred_element_type=jnp.float32)

    @pl.when(k == pl.num_programs(1) - 1)
    def _():
        o_ref[...] = acc_ref[...].astype(o_ref.dtype)


# ---------------------------------------------------------------------------
# Wrapper
# ---------------------------------------------------------------------------

def prepare_params(w1, b1, w2, b2):
    """One-time pad to (Cp, Hp)/(Hp, Cp) multiples of 128 and cast to bf16.

    Doing this at init removes the per-call pad/convert HBM passes the previous
    version paid on every invocation."""
    C, H = w1.shape
    Cp, Hp = _round_up(C, 128), _round_up(H, 128)
    w1p = jnp.zeros((Cp, Hp), jnp.bfloat16).at[:C, :H].set(w1.astype(jnp.bfloat16))
    b1p = jnp.zeros((1, Hp), jnp.float32).at[0, :H].set(b1.astype(jnp.float32))
    w2p = jnp.zeros((Hp, Cp), jnp.bfloat16).at[:H, :C].set(w2.astype(jnp.bfloat16))
    b2p = jnp.zeros((1, Cp), jnp.float32).at[0, :C].set(b2.astype(jnp.float32))
    return {"w1": w1p, "b1": b1p, "w2": w2p, "b2": b2p, "C": C, "H": H}


@functools.lru_cache(maxsize=1)
def _usable_vmem_bytes():
    """Generation-aware VMEM budget (~85% of physical; ~108 MiB v5e/v6e, ~54 MiB v7x)."""
    try:
        cap = int(pltpu.get_tpu_info().vmem_capacity_bytes)
    except Exception:
        cap = 64 << 20            # conservative (v7x-safe) fallback
    return int(cap * 0.85)


# Cache for whether pipeline_mode=pl.Buffered(1) is accepted by this JAX build.
_single_buffer_ok = {"ok": True}


def feed_forward(x, params, *, tile_m=512, hidden_tile=None):
    """y = Dropout_{p=0}(ReLU(x @ W1 + b1) @ W2 + b2);  x: (B, T, C) float32."""
    B, T, C = x.shape
    assert C == params["C"]
    w1p, b1p, w2p, b2p = params["w1"], params["b1"], params["w2"], params["b2"]
    Cp, Hp = w1p.shape
    M = B * T

    # --- Token tile: sublane multiple of 8; guarantee >= 2 tiles when M > 8 so
    # the "parallel" axis can be sharded across both v7x TensorCores.
    TM = min(tile_m, _round_up(M, 8))
    if _round_up(M, TM) // TM < 2 and M > 8:
        TM = _round_up(-(-M // 2), 8)
    TM = max(TM, 8)
    Mp = _round_up(M, TM)

    x2d = x.reshape(M, C)
    if (Cp != C) or (Mp != M):
        # Ragged shapes: pad once (and cast to bf16 in the same pass to halve
        # the kernel-side activation DMA).
        xin = jnp.zeros((Mp, Cp), jnp.bfloat16).at[:M, :C].set(x2d.astype(jnp.bfloat16))
        padded = True
        x_bytes = 2
    else:
        # Lane-aligned fast path: stream x as-is, cast to bf16 in-kernel.
        xin = x2d
        padded = False
        x_bytes = 4

    usable = _usable_vmem_bytes()

    # Honest resident-scheme VMEM bound (worst case: weights double-buffered in
    # case the single-buffer request is not honored by this JAX build).
    resident_bytes = (
        2 * 2 * Cp * Hp * 2          # w1 + w2 slabs (bf16), x2 buffers worst case
        + 2 * (Hp + Cp) * 4          # biases (f32)
        + 2 * TM * Cp * x_bytes      # x tile, double-buffered
        + 2 * TM * Cp * 4            # out tile (f32), double-buffered
        + TM * Hp * (4 + 2)          # hidden activation: f32 + bf16 copy
        + (2 << 20)                  # headroom
    )

    use_htiled = (hidden_tile is not None) or (resident_bytes > usable)

    if not use_htiled:
        # -------------------- resident-weights path --------------------
        grid = (Mp // TM,)
        cost = pl.CostEstimate(
            flops=4 * Mp * Cp * Hp, transcendentals=0,
            bytes_accessed=(xin.size * x_bytes + w1p.size * 2 + w2p.size * 2
                            + (b1p.size + b2p.size) * 4 + Mp * Cp * 4))
        vmem_limit = int(min(max(resident_bytes, 32 << 20), usable))

        def build(single_buffer):
            if single_buffer:
                def res(shape):
                    return pl.BlockSpec(shape, lambda i: (0, 0),
                                        pipeline_mode=pl.Buffered(1))
            else:
                def res(shape):
                    return pl.BlockSpec(shape, lambda i: (0, 0))
            return pl.pallas_call(
                _ffw_resident_kernel,
                out_shape=jax.ShapeDtypeStruct((Mp, Cp), jnp.float32),
                grid_spec=pltpu.PrefetchScalarGridSpec(
                    num_scalar_prefetch=0,
                    grid=grid,
                    in_specs=[
                        pl.BlockSpec((TM, Cp), lambda i: (i, 0)),  # x: streamed
                        res((Cp, Hp)),                             # w1: resident
                        res((1, Hp)),                              # b1: resident
                        res((Hp, Cp)),                             # w2: resident
                        res((1, Cp)),                              # b2: resident
                    ],
                    out_specs=pl.BlockSpec((TM, Cp), lambda i: (i, 0)),
                ),
                compiler_params=pltpu.CompilerParams(
                    dimension_semantics=("parallel",),
                    vmem_limit_bytes=vmem_limit,
                ),
                cost_estimate=cost,
            )

        out = None
        if _single_buffer_ok["ok"]:
            try:
                out = build(True)(xin, w1p, b1p, w2p, b2p)
            except Exception:
                # This JAX build rejects Buffered(1); fall back to default buffering.
                _single_buffer_ok["ok"] = False
                out = None
        if out is None:
            out = build(False)(xin, w1p, b1p, w2p, b2p)
    else:
        # -------------------- hidden-dim tiled path (v7x / large C) --------------------
        def htiled_bytes(th):
            return (2 * Cp * th * 2 * 2      # w1 & w2 blocks (bf16), double-buffered
                    + 2 * th * 4 * 2         # b1 blocks
                    + 2 * Cp * 4             # b2
                    + 2 * TM * Cp * x_bytes  # x tile, double-buffered
                    + 2 * TM * Cp * 4        # out tile, double-buffered
                    + TM * Cp * 4            # f32 accumulator scratch
                    + TM * th * (4 + 2)      # hidden activation f32 + bf16
                    + (2 << 20))

        if hidden_tile is not None:
            TH = hidden_tile
        else:
            TH = 128
            for n in range(1, Hp // 128 + 1):
                cand = Hp // n
                if Hp % n == 0 and cand % 128 == 0 and htiled_bytes(cand) <= usable:
                    TH = cand
                    break
        assert Hp % TH == 0 and TH % 128 == 0

        grid = (Mp // TM, Hp // TH)
        cost = pl.CostEstimate(
            flops=4 * Mp * Cp * Hp, transcendentals=0,
            bytes_accessed=(xin.size * x_bytes
                            + (Mp // TM) * (w1p.size + w2p.size) * 2
                            + (b1p.size + b2p.size) * 4 + Mp * Cp * 4))
        vmem_limit = int(min(max(htiled_bytes(TH), 32 << 20), usable))

        out = pl.pallas_call(
            _ffw_htiled_kernel,
            out_shape=jax.ShapeDtypeStruct((Mp, Cp), jnp.float32),
            grid_spec=pltpu.PrefetchScalarGridSpec(
                num_scalar_prefetch=0,
                grid=grid,
                in_specs=[
                    pl.BlockSpec((TM, Cp), lambda i, k: (i, 0)),  # x tile (reused across k)
                    pl.BlockSpec((Cp, TH), lambda i, k: (0, k)),  # w1 hidden-column block
                    pl.BlockSpec((1, TH), lambda i, k: (0, k)),   # b1 block
                    pl.BlockSpec((TH, Cp), lambda i, k: (k, 0)),  # w2 hidden-row block
                    pl.BlockSpec((1, Cp), lambda i, k: (0, 0)),   # b2 (resident)
                ],
                out_specs=pl.BlockSpec((TM, Cp), lambda i, k: (i, 0)),
                scratch_shapes=[pltpu.VMEM((TM, Cp), jnp.float32)],
            ),
            compiler_params=pltpu.CompilerParams(
                dimension_semantics=("parallel", "arbitrary"),
                vmem_limit_bytes=vmem_limit,
            ),
            cost_estimate=cost,
        )(xin, w1p, b1p, w2p, b2p)

    if padded:
        out = out[:M, :C]
    return out.reshape(B, T, C)


def init_params(key, n_embd):
    """Deterministic init mimicking nn.Linear's U(-1/sqrt(fan_in), 1/sqrt(fan_in))."""
    hidden = 4 * n_embd
    k1, k2, k3, k4 = jax.random.split(key, 4)
    lim1 = 1.0 / jnp.sqrt(n_embd)
    lim2 = 1.0 / jnp.sqrt(hidden)
    # Stored already transposed relative to PyTorch: (in_features, out_features).
    w1 = jax.random.uniform(k1, (n_embd, hidden), jnp.float32, -lim1, lim1)
    b1 = jax.random.uniform(k2, (hidden,), jnp.float32, -lim1, lim1)
    w2 = jax.random.uniform(k3, (hidden, n_embd), jnp.float32, -lim2, lim2)
    b2 = jax.random.uniform(k4, (n_embd,), jnp.float32, -lim2, lim2)
    return w1, b1, w2, b2


if __name__ == "__main__":
    n_embd = 64
    B, T = 2, 8

    key = jax.random.PRNGKey(0)
    kx, kp = jax.random.split(key)
    x = jax.random.normal(kx, (B, T, n_embd), jnp.float32)
    w1, b1, w2, b2 = init_params(kp, n_embd)
    params = prepare_params(w1, b1, w2, b2)   # one-time pad + bf16 cast

    # Plain-f32 reference (same math as the PyTorch module). Kernel uses bf16
    # MXU operands with f32 accumulation, hence the loosened tolerances.
    ref = jnp.maximum(x.reshape(-1, n_embd) @ w1 + b1, 0.0) @ w2 + b2
    ref = ref.reshape(B, T, n_embd)

    # Path 1: resident-weights kernel (the common case on v5e/v6e).
    y = jax.block_until_ready(feed_forward(x, params))
    assert y.shape == (B, T, n_embd)
    assert jnp.allclose(y, ref, atol=5e-2, rtol=5e-2), float(jnp.max(jnp.abs(y - ref)))

    # Path 2: hidden-dim tiled kernel (v7x fallback when weights exceed VMEM),
    # exercised here with a forced small hidden tile so both paths are validated.
    y2 = jax.block_until_ready(feed_forward(x, params, hidden_tile=128))
    assert jnp.allclose(y2, ref, atol=5e-2, rtol=5e-2), float(jnp.max(jnp.abs(y2 - ref)))

    print("KERNEL_OK")
</pallas_src>

<mosaic_0001>
module attributes {stable_mosaic.version = 11 : i64} {
  func.func @_ffw_resident_kernel(%arg0: i32, %arg1: memref<8x128xbf16, #tpu.memory_space<vmem>>, %arg2: memref<128x256xbf16, #tpu.memory_space<vmem>>, %arg3: memref<1x256xf32, #tpu.memory_space<vmem>>, %arg4: memref<256x128xbf16, #tpu.memory_space<vmem>>, %arg5: memref<1x128xf32, #tpu.memory_space<vmem>>, %arg6: memref<8x128xf32, #tpu.memory_space<vmem>>) attributes {dimension_semantics = [#tpu.dimension_semantics<parallel>], iteration_bounds = array<i64: 2>, scalar_prefetch = 0 : i64, scratch_operands = 0 : i64, tpu.core_type = #tpu.core_type<tc>, window_params = [{transform_indices = @transform_0, window_bounds = array<i64: 8, 128>}, {pipeline_mode = #tpu.pipeline_mode<synchronous>, transform_indices = @transform_1, window_bounds = array<i64: 128, 256>}, {pipeline_mode = #tpu.pipeline_mode<synchronous>, transform_indices = @transform_2, window_bounds = array<i64: 1, 256>}, {pipeline_mode = #tpu.pipeline_mode<synchronous>, transform_indices = @transform_3, window_bounds = array<i64: 256, 128>}, {pipeline_mode = #tpu.pipeline_mode<synchronous>, transform_indices = @transform_4, window_bounds = array<i64: 1, 128>}, {transform_indices = @transform_5, window_bounds = array<i64: 8, 128>}]} {
    %c0 = arith.constant 0 : index
    %c0_0 = arith.constant 0 : index
    %0 = vector.load %arg1[%c0, %c0_0] : memref<8x128xbf16, #tpu.memory_space<vmem>>, vector<8x128xbf16>
    %c0_1 = arith.constant 0 : index
    %c0_2 = arith.constant 0 : index
    %1 = vector.load %arg2[%c0_1, %c0_2] : memref<128x256xbf16, #tpu.memory_space<vmem>>, vector<128x256xbf16>
    %cst = arith.constant dense<0.000000e+00> : vector<8x256xf32>
    %2 = tpu.matmul %0, %1, %cst {dimension_numbers = #tpu.dot_dimension_numbers<[1], [0], [0], [1], [0, 0, 1, 1], [], []>} : vector<8x128xbf16>, vector<128x256xbf16>, vector<8x256xf32> -> vector<8x256xf32>
    %c0_3 = arith.constant 0 : index
    %c0_4 = arith.constant 0 : index
    %3 = vector.load %arg3[%c0_3, %c0_4] : memref<1x256xf32, #tpu.memory_space<vmem>>, vector<1x256xf32>
    %4 = vector.broadcast %3 : vector<1x256xf32> to vector<8x256xf32>
    %5 = arith.addf %2, %4 : vector<8x256xf32>
    %cst_5 = arith.constant 0.000000e+00 : f32
    %6 = vector.broadcast %cst_5 : f32 to vector<8x256xf32>
    %7 = arith.maximumf %5, %6 : vector<8x256xf32>
    %8 = arith.truncf %7 : vector<8x256xf32> to vector<8x256xbf16>
    %c0_6 = arith.constant 0 : index
    %c0_7 = arith.constant 0 : index
    %9 = vector.load %arg4[%c0_6, %c0_7] : memref<256x128xbf16, #tpu.memory_space<vmem>>, vector<256x128xbf16>
    %cst_8 = arith.constant dense<0.000000e+00> : vector<8x128xf32>
    %10 = tpu.matmul %8, %9, %cst_8 {dimension_numbers = #tpu.dot_dimension_numbers<[1], [0], [0], [1], [0, 0, 1, 1], [], []>} : vector<8x256xbf16>, vector<256x128xbf16>, vector<8x128xf32> -> vector<8x128xf32>
    %c0_9 = arith.constant 0 : index
    %c0_10 = arith.constant 0 : index
    %11 = vector.load %arg5[%c0_9, %c0_10] : memref<1x128xf32, #tpu.memory_space<vmem>>, vector<1x128xf32>
    %12 = vector.broadcast %11 : vector<1x128xf32> to vector<8x128xf32>
    %13 = arith.addf %10, %12 : vector<8x128xf32>
    %c0_11 = arith.constant 0 : index
    %c0_12 = arith.constant 0 : index
    %14 = vector.load %arg6[%c0_11, %c0_12] : memref<8x128xf32, #tpu.memory_space<vmem>>, vector<8x128xf32>
    tpu.vector_store %arg6[%c0_11, %c0_12], %13 {strides = array<i32>} : memref<8x128xf32, #tpu.memory_space<vmem>>, vector<8x128xf32>,
    return
  }
  func.func @transform_0(%arg0: i32) -> (i32, i32) {
    %c0_i32 = arith.constant 0 : i32
    %c0_i32_0 = arith.constant 0 : i32
    return %arg0, %c0_i32 : i32, i32
  }
  func.func @transform_1(%arg0: i32) -> (i32, i32) {
    %c0_i32 = arith.constant 0 : i32
    %c0_i32_0 = arith.constant 0 : i32
    %c0_i32_1 = arith.constant 0 : i32
    return %c0_i32, %c0_i32_0 : i32, i32
  }
  func.func @transform_2(%arg0: i32) -> (i32, i32) {
    %c0_i32 = arith.constant 0 : i32
    %c0_i32_0 = arith.constant 0 : i32
    %c0_i32_1 = arith.constant 0 : i32
    return %c0_i32, %c0_i32_0 : i32, i32
  }
  func.func @transform_3(%arg0: i32) -> (i32, i32) {
    %c0_i32 = arith.constant 0 : i32
    %c0_i32_0 = arith.constant 0 : i32
    %c0_i32_1 = arith.constant 0 : i32
    return %c0_i32, %c0_i32_0 : i32, i32
  }
  func.func @transform_4(%arg0: i32) -> (i32, i32) {
    %c0_i32 = arith.constant 0 : i32
    %c0_i32_0 = arith.constant 0 : i32
    %c0_i32_1 = arith.constant 0 : i32
    return %c0_i32, %c0_i32_0 : i32, i32
  }
  func.func @transform_5(%arg0: i32) -> (i32, i32) {
    %c0_i32 = arith.constant 0 : i32
    %c0_i32_0 = arith.constant 0 : i32
    return %arg0, %c0_i32 : i32, i32
  }
}

module attributes {stable_mosaic.version = 11 : i64} {
  func.func @_ffw_resident_kernel(%arg0: i32, %arg1: memref<8x128xbf16, #tpu.memory_space<vmem>>, %arg2: memref<128x256xbf16, #tpu.memory_space<vmem>>, %arg3: memref<1x256xf32, #tpu.memory_space<vmem>>, %arg4: memref<256x128xbf16, #tpu.memory_space<vmem>>, %arg5: memref<1x128xf32, #tpu.memory_space<vmem>>, %arg6: memref<8x128xf32, #tpu.memory_space<vmem>>) attributes {dimension_semantics = [#tpu.dimension_semantics<parallel>], iteration_bounds = array<i64: 2>, scalar_prefetch = 0 : i64, scratch_operands = 0 : i64, tpu.core_type = #tpu.core_type<tc>, window_params = [{transform_indices = @transform_0, window_bounds = array<i64: 8, 128>}, {pipeline_mode = #tpu.pipeline_mode<synchronous>, transform_indices = @transform_1, window_bounds = array<i64: 128, 256>}, {pipeline_mode = #tpu.pipeline_mode<synchronous>, transform_indices = @transform_2, window_bounds = array<i64: 1, 256>}, {pipeline_mode = #tpu.pipeline_mode<synchronous>, transform_indices = @transform_3, window_bounds = array<i64: 256, 128>}, {pipeline_mode = #tpu.pipeline_mode<synchronous>, transform_indices = @transform_4, window_bounds = array<i64: 1, 128>}, {transform_indices = @transform_5, window_bounds = array<i64: 8, 128>}]} {
    %c0 = arith.constant 0 : index
    %c0_0 = arith.constant 0 : index
    %0 = vector.load %arg1[%c0, %c0_0] : memref<8x128xbf16, #tpu.memory_space<vmem>>, vector<8x128xbf16>
    %c0_1 = arith.constant 0 : index
    %c0_2 = arith.constant 0 : index
    %1 = vector.load %arg2[%c0_1, %c0_2] : memref<128x256xbf16, #tpu.memory_space<vmem>>, vector<128x256xbf16>
    %cst = arith.constant dense<0.000000e+00> : vector<8x256xf32>
    %2 = tpu.matmul %0, %1, %cst {dimension_numbers = #tpu.dot_dimension_numbers<[1], [0], [0], [1], [0, 0, 1, 1], [], []>} : vector<8x128xbf16>, vector<128x256xbf16>, vector<8x256xf32> -> vector<8x256xf32>
    %c0_3 = arith.constant 0 : index
    %c0_4 = arith.constant 0 : index
    %3 = vector.load %arg3[%c0_3, %c0_4] : memref<1x256xf32, #tpu.memory_space<vmem>>, vector<1x256xf32>
    %4 = vector.broadcast %3 : vector<1x256xf32> to vector<8x256xf32>
    %5 = arith.addf %2, %4 : vector<8x256xf32>
    %cst_5 = arith.constant 0.000000e+00 : f32
    %6 = vector.broadcast %cst_5 : f32 to vector<8x256xf32>
    %7 = arith.maximumf %5, %6 : vector<8x256xf32>
    %8 = arith.truncf %7 : vector<8x256xf32> to vector<8x256xbf16>
    %c0_6 = arith.constant 0 : index
    %c0_7 = arith.constant 0 : index
    %9 = vector.load %arg4[%c0_6, %c0_7] : memref<256x128xbf16, #tpu.memory_space<vmem>>, vector<256x128xbf16>
    %cst_8 = arith.constant dense<0.000000e+00> : vector<8x128xf32>
    %10 = tpu.matmul %8, %9, %cst_8 {dimension_numbers = #tpu.dot_dimension_numbers<[1], [0], [0], [1], [0, 0, 1, 1], [], []>} : vector<8x256xbf16>, vector<256x128xbf16>, vector<8x128xf32> -> vector<8x128xf32>
    %c0_9 = arith.constant 0 : index
    %c0_10 = arith.constant 0 : index
    %11 = vector.load %arg5[%c0_9, %c0_10] : memref<1x128xf32, #tpu.memory_space<vmem>>, vector<1x128xf32>
    %12 = vector.broadcast %11 : vector<1x128xf32> to vector<8x128xf32>
    %13 = arith.addf %10, %12 : vector<8x128xf32>
    %c0_11 = arith.constant 0 : index
    %c0_12 = arith.constant 0 : index
    %14 = vector.load %arg6[%c0_11, %c0_12] : memref<8x128xf32, #tpu.memory_space<vmem>>, vector<8x128xf32>
    tpu.vector_store %arg6[%c0_11, %c0_12], %13 {strides = array<i32>} : memref<8x128xf32, #tpu.memory_space<vmem>>, vector<8x128xf32>,
    return
  }
  func.func @transform_0(%arg0: i32) -> (i32, i32) {
    %c0_i32 = arith.constant 0 : i32
    %c0_i32_0 = arith.constant 0 : i32
    return %arg0, %c0_i32 : i32, i32
  }
  func.func @transform_1(%arg0: i32) -> (i32, i32) {
    %c0_i32 = arith.constant 0 : i32
    %c0_i32_0 = arith.constant 0 : i32
    %c0_i32_1 = arith.constant 0 : i32
    return %c0_i32, %c0_i32_0 : i32, i32
  }
  func.func @transform_2(%arg0: i32) -> (i32, i32) {
    %c0_i32 = arith.constant 0 : i32
    %c0_i32_0 = arith.constant 0 : i32
    %c0_i32_1 = arith.constant 0 : i32
    return %c0_i32, %c0_i32_0 : i32, i32
  }
  func.func @transform_3(%arg0: i32) -> (i32, i32) {
    %c0_i32 = arith.constant 0 : i32
    %c0_i32_0 = arith.constant 0 : i32
    %c0_i32_1 = arith.constant 0 : i32
    return %c0_i32, %c0_i32_0 : i32, i32
  }
  func.func @transform_4(%arg0: i32) -> (i32, i32) {
    %c0_i32 = arith.constant 0 : i32
    %c0_i32_0 = arith.constant 0 : i32
    %c0_i32_1 = arith.constant 0 : i32
    return %c0_i32, %c0_i32_0 : i32, i32
  }
  func.func @transform_5(%arg0: i32) -> (i32, i32) {
    %c0_i32 = arith.constant 0 : i32
    %c0_i32_0 = arith.constant 0 : i32
    return %arg0, %c0_i32 : i32, i32
  }
}

</mosaic_0001>

<bundles_post_ra>
// kernel: tpu_custom_call.1
= control target key start
LH: loop header
LB: loop body
LE: loop exit
PB: predicated region body
PF: predicated region fallthrough
CT: control target
= control target key end

     0   :  { %10 = vsyncpa [#allocation3], 0  ;;  %s1322_s0 = inlined_call_operand.hbm [shape: bf16[16,128], index: 0, kind: input, shape index: {}]   ;;  %s1323_s1 = inlined_call_operand.hbm [shape: bf16[128,256], index: 1, kind: input, shape index: {}]   ;;  %s1324_s2 = inlined_call_operand.vmem [shape: f32[1,256], index: 2, kind: input, shape index: {}]   ;;  %s1325_s3 = inlined_call_operand.hbm [shape: bf16[256,128], index: 3, kind: input, shape index: {}]   ;;  %s1326_s4 = inlined_call_operand.vmem [shape: f32[1,128], index: 4, kind: input, shape index: {}]   ;;  %s1327_s5 = inlined_call_operand.hbm [shape: f32[16,128], index: 5, kind: output, shape index: {}]  }
   0x1   :  { %12 = vsyncpa [#allocation3 + $0x1], 0 }
   0x2   :  { %13 = vsyncpa [#allocation6], 0 }
   0x3   :  { %14 = vsyncpa [#allocation4], 0 }
   0x4   :  { %16 = vsyncpa [#allocation4 + $0x1], 0  ;;  %s1083_s18 = smov 0   ;;  %s1085_s19 = smov 0  }
   0x5   :  { %s1087_s20 = smov 0   ;;  %s1089_s21 = smov 0  }
   0x6 LB: > { %s1104_s22 = sadd.s32 4294967295, %s1042_s21   ;;  %s703_s23 = sadd.s32 4294967294, %s1042_s21   ;;  %s1042_s21 = sphi %s1089_s21, %s1347_s21   ;;  %s1038_s20 = sphi %s1087_s20, %s1346_s20   ;;  %s1034_s19 = sphi %s1085_s19, %s1345_s19   ;;  %s1030_s18 = sphi %s1083_s18, %s1344_s18  }
   0x7   : > { %p42_p0 = scmp.ne.s32.totalorder %s1034_s19, %s1030_s18  ;;  %p1328_p1 = scmp.eq.s32.totalorder %s1104_s22, 0 }
   0x8   : > { %p156_p3 = scmp.eq.s32.totalorder %s703_s23, 1  ;;  %p704_p5 = scmp.ge.s32.totalorder %s1042_s21, 1 }
   0x9   : > { %p1113_p4 = por %p1328_p1, %p42_p0  ;;  %p163_p7 = scmp.lt.s32.totalorder %s1042_s21, 3 }
   0xa   : > { %p1118_p6 = por %p156_p3, %p42_p0  ;;  %s1044_s27 = smov [#allocation5]  }
   0xb   : > { %s1331_s24 = scalar_select %p1113_p4, 1, 0 }
   0xc   : > { %s1332_s25 = scalar_select %p1118_p6, 1, 0 }
   0xd   : > { %p1123_p8 = pnand %p704_p5, %p163_p7  ;;  %s175_s28 = sshll.u32 %s1044_s27, 4  ;;  %s1127_s28 = int_to_ptr.vmem [resolvable:$true] %s175_s28 }
   0xe   : > { %s1045_s30 = smov [#allocation7]   ;;  %s886_s9 = scalar_lea.hbm %s1323_s1, 2048 }
   0xf   : > { %p786_p9 = pneg %p1123_p8  ;;  %s191_s6 = sshll.u32 %s1045_s30, 4  ;;  %s1138_s6 = int_to_ptr.vmem [resolvable:$true] %s191_s6 }
  0x10   : > { %p887_p12 = scmp.ne.s32.totalorder %s1323_s1, %s886_s9  ;;  %p893_p5 = scmp.lt.u32.totalorder %s886_s9, %s1323_s1 }
  0x11   : > { %p1134_p11 = pnand %p786_p9, %p1328_p1 }
  0x13   : > { %p888_p13 = pneg %p1134_p11 }
  0x15   : > { %p889_p0 = pnand %p888_p13, %p887_p12 }
  0x17   : > { %p890_p3 = pneg %p889_p0 }
  0x19   : > { %p895_p7 = pnand %p893_p5, %p890_p3 }
  0x1b   : > { %898 = shalt.err (!%p895_p7)
}
  0x1c   : > { %s899_s14 = scalar_lea.vmem %s1127_s28, 2048  ;;  %p907_p2 = scmp.lt.s32.totalorder %s1127_s28, %s1127_s28 }
  0x1d   : > { %p900_p9 = scmp.ne.s32.totalorder %s1127_s28, %s899_s14  ;;  %p908_p12 = scmp.lt.s32.totalorder %s899_s14, %s899_s14 }
  0x1f   : > { %p902_p10 = pnand %p900_p9, %p888_p13  ;;  %p909_p0 = por %p908_p12, %p907_p2 }
  0x21   : > { %p903_p1 = pneg %p902_p10 }
  0x23   : > { %p910_p6 = pnand %p909_p0, %p903_p1 }
  0x25   : > { %913 = shalt.err (!%p910_p6)
}
  0x26   : > { %s1046_s15 = smov 128   ;;  %s1047_s16 = smov 8  }
  0x27   : > { %789 = dma.hbm_to_vmem [thread:$0]  (!%p1134_p11), %s1323_s1, 2048, %s1127_s28, [#allocation6], %s1046_s15, %s1046_s15, %s1047_s16  }
  0x28   : > { %s914_s7 = scalar_lea.hbm %s1325_s3, 2048 }
  0x29   : > { %p915_p2 = scmp.ne.s32.totalorder %s1325_s3, %s914_s7  ;;  %p921_p10 = scmp.lt.u32.totalorder %s914_s7, %s1325_s3 }
  0x2b   : > { %p917_p1 = pnand %p915_p2, %p888_p13 }
  0x2d   : > { %p918_p6 = pneg %p917_p1 }
  0x2f   : > { %p923_p3 = pnand %p921_p10, %p918_p6 }
  0x31   : > { %926 = shalt.err (!%p923_p3)
}
  0x32   : > { %s927_s28 = scalar_lea.vmem %s1138_s6, 2048  ;;  %p935_p12 = scmp.lt.s32.totalorder %s1138_s6, %s1138_s6 }
  0x33   : > { %p928_p5 = scmp.ne.s32.totalorder %s1138_s6, %s927_s28  ;;  %p936_p0 = scmp.lt.s32.totalorder %s927_s28, %s927_s28 }
  0x35   : > { %p930_p7 = pnand %p928_p5, %p888_p13  ;;  %p937_p2 = por %p936_p0, %p935_p12 }
  0x37   : > { %p931_p9 = pneg %p930_p7 }
  0x39   : > { %p938_p1 = pnand %p937_p2, %p931_p9 }
  0x3b   : > { %941 = shalt.err (!%p938_p1)
}
  0x3c   : > { %s1048_s12 = smov 64   ;;  %s1049_s13 = smov 4  }
  0x3d   : > { %792 = dma.hbm_to_vmem [thread:$0]  (!%p1134_p11), %s1325_s3, 2048, %s1138_s6, [#allocation6], %s1048_s12, %s1048_s12, %s1049_s13  }
  0x3e   : > { %s1193_s16 = sadd.s32 1, %s1042_s21   ;;  %s29_s23 = sadd.s32 1, %s1038_s20 }
  0x3f   : > { %s26_s17 = ssub.s32 %s1042_s21, %s1193_s16  ;;  %p36_p6 = scmp.ne.s32.totalorder %s1038_s20, %s1034_s19 }
  0x40   : > { %p27_p13 = scmp.eq.s32.totalorder %s26_s17, 0  ;;  %p37_p10 = scmp.eq.s32.totalorder %s1042_s21, 0 }
  0x41   : > { %p1335_p5 = scmp.eq.s32.totalorder %s1104_s22, 1  ;;  %p803_p9 = scmp.lt.s32.totalorder %s1042_s21, 2 }
  0x42   : > { %s1202_s27 = scalar_select %p27_p13, %s1038_s20, %s29_s23  }
  0x43   : > { %p38_p3 = por %p37_p10, %p36_p6  ;;  %p1206_p7 = por %p1335_p5, %p36_p6 }
  0x44   : > { %s208_s29 = sand.u32 1, %s1038_s20   ;;  %s709_s6 = sshll.u32 %s1042_s21, 6 }
  0x45   : > { %s1336_s30 = scalar_select %p1206_p7, 1, 0 }
  0x46   : > { %s708_s7 = sshll.u32 %s208_s29, 2  ;;  %s1216_s10 = scalar_lea.hbm %s1322_s0, %s709_s6 }
  0x47   : > { %s212_s11 = scalar_lea.vmem [#allocation2], %s708_s7  ;;  %p1220_p11 = pnand %p803_p9, %p38_p3 }
  0x48   : > { %s219_s28 = sshll.u32 %s212_s11, 4  ;;  %s209_s13 = scalar_lea.sflag [#allocation3], %s208_s29  ;;  %s1218_s28 = int_to_ptr.vmem [resolvable:$true] %s219_s28 }
  0x49   : > { %s942_s14 = scalar_lea.hbm %s1216_s10, 64  ;;  %p944_p0 = pneg %p1220_p11 }
  0x4a   : > { %p943_p12 = scmp.ne.s32.totalorder %s1216_s10, %s942_s14  ;;  %s947_s23 = scalar_lea.hbm %s1322_s0, 128 }
  0x4b   : > { %p948_p13 = scmp.lt.u32.totalorder %s1216_s10, %s1322_s0  ;;  %p949_p6 = scmp.lt.u32.totalorder %s947_s23, %s942_s14 }
  0x4c   : > { %p945_p2 = pnand %p944_p0, %p943_p12  ;;  %p951_p3 = scmp.lt.u32.totalorder %s942_s14, %s1216_s10 }
  0x4d   : > { %p950_p10 = por %p949_p6, %p948_p13 }
  0x4e   : > { %p946_p1 = pneg %p945_p2 }
  0x4f   : > { %p952_p5 = por %p951_p3, %p950_p10 }
  0x51   : > { %p953_p9 = pnand %p952_p5, %p946_p1 }
  0x53   : > { %956 = shalt.err (!%p953_p9)
}
  0x54   : > { %s957_s29 = scalar_lea.vmem %s1218_s28, 64  ;;  %s1050_s8 = smov [#allocation2]  }
  0x55   : > { %p958_p12 = scmp.ne.s32.totalorder %s1218_s28, %s957_s29  ;;  %s962_s9 = sshll.u32 %s1050_s8, 4  ;;  %s963_s9 = int_to_ptr.vmem [resolvable:$false] %s962_s9 }
  0x56   : > { %s964_s11 = scalar_lea.vmem %s963_s9, 128  ;;  %p965_p4 = scmp.lt.s32.totalorder %s1218_s28, %s963_s9 }
  0x57   : > { %p960_p2 = pnand %p958_p12, %p944_p0  ;;  %p966_p13 = scmp.lt.s32.totalorder %s964_s11, %s957_s29 }
  0x59   : > { %p961_p7 = pneg %p960_p2  ;;  %p967_p6 = por %p966_p13, %p965_p4 }
  0x5b   : > { %p968_p10 = pnand %p967_p6, %p961_p7 }
  0x5d   : > { %971 = shalt.err (!%p968_p10)
}
  0x5e   : > { %796 = dma.hbm_to_vmem [thread:$0]  (!%p1220_p11), %s1216_s10, 64, %s1218_s28, %s209_s13  }
  0x5f   : > { %228 = sbr.rel (%p1123_p8) target bundleno = 590 (0x24e), region = 40  ;;  %s1252_s14 = sand.u32 (!%p1123_p8), 1, %s1034_s19  }
  0x60   : > { %s711_s15 = sshll.u32 (!%p1123_p8), %s1252_s14, 2  ;;  %s231_s17 = scalar_lea.sflag (!%p1123_p8), [#allocation3], %s1252_s14 }
  0x61   : > { %s1256_s23 = scalar_lea.vmem (!%p1123_p8), [#allocation2], %s711_s15  ;;  %p1338_p4 = scmp.ne.s32.totalorder (!%p1123_p8), %s1331_s24, 0 }
  0x66   : > { %1017 = dma.done.wait (%p1338_p4), %s231_s17, 64  }
  0x67   : > { %1019 = vsyncadd (%p1338_p4), %s231_s17, 4294967232  ;;  %p1339_p7 = scmp.eq.s32.totalorder %s1104_s22, 0 }
  0x69   : > { %1021 = dma.done.wait (%p1339_p7), [#allocation6], 4096   ;;  %p1340_p8 = pmov %p1339_p7 }
  0x6a   : > { %v1051_v0 = vmov 0   ;;  %v846_v1 = vld [vmem:[#allocation5 + $0x4] ss:$8 sps:$4 sm:$0xff]   ;;  %v848_v2 = vld [vmem:[#allocation5] ss:$8 sps:$4 sm:$0xff]   ;;  %v874_v15 = vld [vmem:[#allocation7 + $0x50] sm:$0xff]   ;;  %v289_v34 = vlaneseq }
  0x6b   : > { %1023 = vsyncadd (%p1340_p8), [#allocation6], 4294963200  ;;  %411 = vmatprep.mubr.bf16.mxu0 %v1051_v0  ;;  %379 = vmatprep.subr.bf16.mxu0 %v846_v1  ;;  %v849_v3 = vld [vmem:[#allocation5 + $0x14] ss:$8 sps:$4 sm:$0xff]   ;;  %v851_v4 = vld [vmem:[#allocation5 + $0x10] ss:$8 sps:$4 sm:$0xff]  }
  0x6c   : > { %380 = vmatpush1.bf16.msra.mxu0 %v848_v2  ;;  %v852_v5 = vld [vmem:[#allocation5 + $0x24] ss:$8 sps:$4 sm:$0xff]   ;;  %v854_v6 = vld [vmem:[#allocation5 + $0x20] ss:$8 sps:$4 sm:$0xff]   ;;  %v855_v7 = vld [vmem:[#allocation5 + $0x34] ss:$8 sps:$4 sm:$0xff]  }
  0x6d   : > { %381 = vmatprep.subr.bf16.mxu0 %v849_v3  ;;  %v857_v8 = vld [vmem:[#allocation5 + $0x30] ss:$8 sps:$4 sm:$0xff]   ;;  %v858_v9 = vld [vmem:[#allocation5 + $0x44] ss:$8 sps:$4 sm:$0xff]   ;;  %v860_v12 = vld [vmem:[#allocation5 + $0x40] ss:$8 sps:$4 sm:$0xff]  }
  0x6e   : > { %v870_v10 = vld [vmem:[#allocation7 + $0x40] sm:$0xff]   ;;  %v872_v13 = vld [vmem:[#allocation7 + $0x48] sm:$0xff]   ;;  %v861_v16 = vld [vmem:[#allocation5 + $0x54] ss:$8 sps:$4 sm:$0xff]   ;;  %v290_v35 = vshrl.u32 %v289_v34, 7  ;;  %s714_s10 = sshll.u32 %s1252_s14, 3 }
  0x6f   : > { %v871_v11 = vld [vmem:[#allocation7] sm:$0xff]   ;;  %752 = vmatprep.subr.bf16.mxu1 %v870_v10  ;;  %v873_v14 = vld [vmem:[#allocation7 + $0x8] sm:$0xff]   ;;  %v863_v17 = vld [vmem:[#allocation5 + $0x50] ss:$8 sps:$4 sm:$0xff]   ;;  %s749_s13 = sshll.u32 %s1104_s22, 7  ;;  %s268_s7 = scalar_lea.vmem [#allocation8], %s714_s10 }
  0x70   : > { %382 = vmatpush1.bf16.msra.mxu0 %v851_v4  ;;  %753 = vmatpush3.bf16.msra.mxu1 %v871_v11  ;;  %v875_v18 = vld [vmem:[#allocation7 + $0x10] sm:$0xff]   ;;  %v876_v19 = vld [vmem:[#allocation7 + $0x58] sm:$0xff]   ;;  %v864_v20 = vld [vmem:[#allocation5 + $0x64] ss:$8 sps:$4 sm:$0xff]   ;;  %v291_v36 = vsub.s32 0, %v290_v35  ;;  %v295_v38 = vsub.s32 1, %v290_v35  ;;  %s1278_s9 = scalar_lea.hbm %s1327_s5, %s749_s13 }
  0x71   : > { %383 = vmatprep.subr.bf16.mxu0 %v852_v5  ;;  %754 = vmatprep.subr.bf16.mxu1 %v872_v13  ;;  %v866_v21 = vld [vmem:[#allocation5 + $0x60] ss:$8 sps:$4 sm:$0xff]   ;;  %v867_v22 = vld [vmem:[#allocation5 + $0x74] ss:$8 sps:$4 sm:$0xff]   ;;  %v869_v26 = vld [vmem:[#allocation5 + $0x70] ss:$8 sps:$4 sm:$0xff]  }
  0x72   : > { %v877_v23 = vld [vmem:[#allocation7 + $0x18] sm:$0xff]   ;;  %v878_v24 = vld [vmem:[#allocation7 + $0x60] sm:$0xff]   ;;  %v880_v27 = vld [vmem:[#allocation7 + $0x68] sm:$0xff]   ;;  %s614_s6 = sshll.u32 %s268_s7, 4  ;;  %s601_s11 = scalar_lea.sflag [#allocation4], %s1252_s14  ;;  %s1280_s6 = int_to_ptr.vmem [resolvable:$true] %s614_s6 }
  0x73   : > { %v879_v25 = vld [vmem:[#allocation7 + $0x20] sm:$0xff]   ;;  %v881_v28 = vld [vmem:[#allocation7 + $0x28] sm:$0xff]   ;;  %v270_v29 = vld [vmem:[%s1256_s23] sm:$0xf]  ;;  %s972_s15 = scalar_lea.vmem %s1280_s6, 128  ;;  %p1341_p0 = scmp.ne.s32.totalorder %s1336_s30, 0 }
  0x74   : > { %384 = vmatpush1.bf16.msra.mxu0 %v854_v6  ;;  %755 = vmatpush3.bf16.msra.mxu1 %v873_v14  ;;  %v882_v30 = vld [vmem:[#allocation7 + $0x70] sm:$0xff]   ;;  %v884_v32 = vld [vmem:[#allocation7 + $0x78] sm:$0xff]   ;;  %p973_p11 = scmp.ne.s32.totalorder %s1280_s6, %s972_s15  ;;  %s1052_s22 = smov [#allocation8]  }
  0x75   : > { %385 = vmatprep.subr.bf16.mxu0 %v855_v7  ;;  %756 = vmatprep.subr.bf16.mxu1 %v874_v15  ;;  %v883_v31 = vld [vmem:[#allocation7 + $0x30] sm:$0xff]   ;;  %v885_v33 = vld [vmem:[#allocation7 + $0x38] sm:$0xff]   ;;  %s976_s17 = sshll.u32 %s1052_s22, 4  ;;  %s977_s17 = int_to_ptr.vmem [resolvable:$false] %s976_s17 }
  0x76   : > { %v287_v37 = vld [vmem:[%s1324_s2] sm:$0x3]  ;;  %p974_p1 = pnand %p973_p11, %p1341_p0  ;;  %s978_s23 = scalar_lea.vmem %s977_s17, 256 }
  0x77   : > { %v292_v39 = vrot.slane %v287_v37, %v291_v36  ;;  %v296_v40 = vrot.slane %v287_v37, %v295_v38  ;;  %v731_v52 = vld [vmem:[%s1326_s4] ss:$0 sm:$0xff]  ;;  %p979_p5 = scmp.lt.s32.totalorder %s1280_s6, %s977_s17  ;;  %p980_p9 = scmp.lt.s32.totalorder %s978_s23, %s972_s15 }
  0x78   : > { %386 = vmatpush1.bf16.msra.mxu0 %v857_v8  ;;  %757 = vmatpush3.bf16.msra.mxu1 %v875_v18  ;;  %p975_p3 = pneg %p974_p1 }
  0x79   : > { %387 = vmatprep.subr.bf16.mxu0 %v858_v9  ;;  %758 = vmatprep.subr.bf16.mxu1 %v876_v19  ;;  %p981_p12 = por %p980_p9, %p979_p5 }
  0x7b   : > { %p982_p2 = pnand %p981_p12, %p975_p3 }
  0x7c   : > { %388 = vmatpush1.bf16.msra.mxu0 %v860_v12  ;;  %759 = vmatpush3.bf16.msra.mxu1 %v877_v23 }
  0x7d   : > { %389 = vmatprep.subr.bf16.mxu0 %v861_v16  ;;  %760 = vmatprep.subr.bf16.mxu1 %v878_v24 }
  0x80   : > { %390 = vmatpush1.bf16.msra.mxu0 %v863_v17  ;;  %761 = vmatpush3.bf16.msra.mxu1 %v879_v25 }
  0x81   : > { %391 = vmatprep.subr.bf16.mxu0 %v864_v20  ;;  %762 = vmatprep.subr.bf16.mxu1 %v880_v27 }
  0x84   : > { %392 = vmatpush1.bf16.msra.mxu0 %v866_v21  ;;  %763 = vmatpush3.bf16.msra.mxu1 %v881_v28 }
  0x85   : > { %393 = vmatprep.subr.bf16.mxu0 %v867_v22  ;;  %764 = vmatprep.subr.bf16.mxu1 %v882_v30 }
  0x88   : > { %394 = vmatpush1.bf16.msra.mxu0 %v869_v26  ;;  %765 = vmatpush3.bf16.msra.mxu1 %v883_v31 }
  0x89   : > { %766 = vmatprep.subr.bf16.mxu1 %v884_v32 }
  0x8b   : > { %412 = vmatmul.mubr.bf16.vlgmr.msra.gmra.mrb[0].mxu0 %v270_v29 }
  0x8c   : > { %767 = vmatpush3.bf16.msra.mxu1 %v885_v33 }
 0x15e   : > { %v413_v41 = vpop.f32.mrb[0].mxu0 }
 0x15f   : > { %v414_v42 = vadd.f32 %v413_v41, %v292_v39  ;;  %v415_v43 = vpop.f32.mrb[1].mxu0 }
 0x160   : > { %v416_v44 = vadd.f32 %v415_v43, %v296_v40  ;;  %v417_v45 = vpop.f32.mrb[2].mxu0 }
 0x161   : > { %v420_v46 = vmax.f32 %v414_v42, 0.0  ;;  %v418_v47 = vpop.f32.mrb[3].mxu0 }
 0x162   : > { %v421_v48 = vmax.f32 %v416_v44, 0.0 }
 0x163   : > { %v422_v50 = vpack.c.bf16 %v420_v46, %v420_v46 }
 0x164   : > { %v423_v49 = vpack.c.bf16 %v421_v48, %v421_v48 }
 0x166   : > { %591 = vmatprep.mubr.bf16.mxu1 %v423_v49 }
 0x167   : > { %592 = vmatmul.mubr.bf16.vlgmr.msra.gmra.mrb[0].mxu1 %v422_v50 }
 0x23a   : > { %v768_v51 = vpop.f32.mrb[0].mxu1 }
 0x23b   : > { %v769_v53 = vpop.f32.mrb[1].mxu1 }
 0x23c   : > { %v770_v54 = vadd.f32 %v769_v53, %v768_v51  ;;  %v771_v55 = vpop.f32.mrb[2].mxu1 }
 0x23d   : > { %v772_v56 = vpop.f32.mrb[3].mxu1 }
 0x23e   : > { %v594_v57 = vadd.f32 %v770_v54, %v731_v52 }
 0x240   : > { %599 = vst [vmem:[%s268_s7] sm:$0xff] %v594_v57 }
 0x241   : > { %985 = shalt.err (!%p982_p2)
}
 0x242   : > { %s986_s14 = scalar_lea.hbm %s1278_s9, 128  ;;  %s990_s10 = scalar_lea.hbm %s1327_s5, 256 }
 0x243   : > { %p987_p13 = scmp.ne.s32.totalorder %s1278_s9, %s986_s14  ;;  %p991_p4 = scmp.lt.u32.totalorder %s1278_s9, %s1327_s5 }
 0x244   : > { %p992_p7 = scmp.lt.u32.totalorder %s990_s10, %s986_s14  ;;  %p994_p11 = scmp.lt.u32.totalorder %s986_s14, %s1278_s9 }
 0x245   : > { %p988_p6 = pnand %p987_p13, %p1341_p0 }
 0x246   : > { %p993_p8 = por %p992_p7, %p991_p4 }
 0x247   : > { %p989_p10 = pneg %p988_p6 }
 0x248   : > { %p995_p1 = por %p994_p11, %p993_p8 }
 0x24a   : > { %p996_p3 = pnand %p995_p1, %p989_p10 }
 0x24c   : > { %999 = shalt.err (!%p996_p3)
}
 0x24d   : > { %784 = dma.vmem_to_hbm [thread:$0]  (%p1341_p0), %s1280_s6, 128, %s1278_s9, %s601_s11  }
 0x24e PF: > { %s626_s13 = sand.u32 1, %s1030_s18   ;;  %p1342_p5 = scmp.ne.s32.totalorder %s1332_s25, 0 }
 0x24f   : > { %p1343_p9 = scmp.ge.s32.totalorder %s1042_s21, 2  ;;  %s627_s7 = scalar_lea.sflag [#allocation4], %s626_s13 }
 0x251   : > { %p798_p12 = pnand %p1343_p9, %p1342_p5 }
 0x253   : > { %1025 = dma.done.wait (!%p798_p12), %s627_s7, 128  }
 0x254   : > { %1027 = vsyncadd (!%p798_p12), %s627_s7, 4294967168  ;;  %p19_p2 = scmp.ge.s32.totalorder %s1193_s16, 4   ;;  %s1344_s18 = smov %s1034_s19 }
 0x255   : > { %s1345_s19 = smov %s1038_s20  ;;  %s1346_s20 = smov %s1202_s27 }
 0x256   : > { %s1347_s21 = smov %s1193_s16  ;;  %21 = sbr.rel (!%p19_p2) target bundleno = 6 (0x6), region = 93 }
 0x25d   :  { %632 = vsyncpa [#allocation3], 1 }
 0x25e   :  { %634 = vsyncpa [#allocation3 + $0x1], 1 }
 0x25f   :  { %635 = vsyncpa [#allocation6], 1 }
 0x260   :  { %636 = vsyncpa [#allocation4], 1 }
 0x261   :  { %638 = vsyncpa [#allocation4 + $0x1], 1 }

// kernel: tpu_custom_call.1
= control target key start
LH: loop header
LB: loop body
LE: loop exit
PB: predicated region body
PF: predicated region fallthrough
CT: control target
= control target key end

     0   :  { %10 = vsyncpa [#allocation3], 0  ;;  %s1322_s0 = inlined_call_operand.hbm [shape: bf16[16,128], index: 0, kind: input, shape index: {}]   ;;  %s1323_s1 = inlined_call_operand.hbm [shape: bf16[128,256], index: 1, kind: input, shape index: {}]   ;;  %s1324_s2 = inlined_call_operand.vmem [shape: f32[1,256], index: 2, kind: input, shape index: {}]   ;;  %s1325_s3 = inlined_call_operand.hbm [shape: bf16[256,128], index: 3, kind: input, shape index: {}]   ;;  %s1326_s4 = inlined_call_operand.vmem [shape: f32[1,128], index: 4, kind: input, shape index: {}]   ;;  %s1327_s5 = inlined_call_operand.hbm [shape: f32[16,128], index: 5, kind: output, shape index: {}]  }
   0x1   :  { %12 = vsyncpa [#allocation3 + $0x1], 0 }
   0x2   :  { %13 = vsyncpa [#allocation6], 0 }
   0x3   :  { %14 = vsyncpa [#allocation4], 0 }
   0x4   :  { %16 = vsyncpa [#allocation4 + $0x1], 0  ;;  %s1083_s18 = smov 0   ;;  %s1085_s19 = smov 0  }
   0x5   :  { %s1087_s20 = smov 0   ;;  %s1089_s21 = smov 0  }
   0x6 LB: > { %s1104_s22 = sadd.s32 4294967295, %s1042_s21   ;;  %s703_s23 = sadd.s32 4294967294, %s1042_s21   ;;  %s1042_s21 = sphi %s1089_s21, %s1347_s21   ;;  %s1038_s20 = sphi %s1087_s20, %s1346_s20   ;;  %s1034_s19 = sphi %s1085_s19, %s1345_s19   ;;  %s1030_s18 = sphi %s1083_s18, %s1344_s18  }
   0x7   : > { %p42_p0 = scmp.ne.s32.totalorder %s1034_s19, %s1030_s18  ;;  %p1328_p1 = scmp.eq.s32.totalorder %s1104_s22, 0 }
   0x8   : > { %p156_p3 = scmp.eq.s32.totalorder %s703_s23, 1  ;;  %p704_p5 = scmp.ge.s32.totalorder %s1042_s21, 1 }
   0x9   : > { %p1113_p4 = por %p1328_p1, %p42_p0  ;;  %p163_p7 = scmp.lt.s32.totalorder %s1042_s21, 3 }
   0xa   : > { %p1118_p6 = por %p156_p3, %p42_p0  ;;  %s1044_s27 = smov [#allocation5]  }
   0xb   : > { %s1331_s24 = scalar_select %p1113_p4, 1, 0 }
   0xc   : > { %s1332_s25 = scalar_select %p1118_p6, 1, 0 }
   0xd   : > { %p1123_p8 = pnand %p704_p5, %p163_p7  ;;  %s175_s28 = sshll.u32 %s1044_s27, 4  ;;  %s1127_s28 = int_to_ptr.vmem [resolvable:$true] %s175_s28 }
   0xe   : > { %s1045_s30 = smov [#allocation7]   ;;  %s886_s9 = scalar_lea.hbm %s1323_s1, 2048 }
   0xf   : > { %p786_p9 = pneg %p1123_p8  ;;  %s191_s6 = sshll.u32 %s1045_s30, 4  ;;  %s1138_s6 = int_to_ptr.vmem [resolvable:$true] %s191_s6 }
  0x10   : > { %p887_p12 = scmp.ne.s32.totalorder %s1323_s1, %s886_s9  ;;  %p893_p5 = scmp.lt.u32.totalorder %s886_s9, %s1323_s1 }
  0x11   : > { %p1134_p11 = pnand %p786_p9, %p1328_p1 }
  0x13   : > { %p888_p13 = pneg %p1134_p11 }
  0x15   : > { %p889_p0 = pnand %p888_p13, %p887_p12 }
  0x17   : > { %p890_p3 = pneg %p889_p0 }
  0x19   : > { %p895_p7 = pnand %p893_p5, %p890_p3 }
  0x1b   : > { %898 = shalt.err (!%p895_p7)
}
  0x1c   : > { %s899_s14 = scalar_lea.vmem %s1127_s28, 2048  ;;  %p907_p2 = scmp.lt.s32.totalorder %s1127_s28, %s1127_s28 }
  0x1d   : > { %p900_p9 = scmp.ne.s32.totalorder %s1127_s28, %s899_s14  ;;  %p908_p12 = scmp.lt.s32.totalorder %s899_s14, %s899_s14 }
  0x1f   : > { %p902_p10 = pnand %p900_p9, %p888_p13  ;;  %p909_p0 = por %p908_p12, %p907_p2 }
  0x21   : > { %p903_p1 = pneg %p902_p10 }
  0x23   : > { %p910_p6 = pnand %p909_p0, %p903_p1 }
  0x25   : > { %913 = shalt.err (!%p910_p6)
}
  0x26   : > { %s1046_s15 = smov 128   ;;  %s1047_s16 = smov 8  }
  0x27   : > { %789 = dma.hbm_to_vmem [thread:$0]  (!%p1134_p11), %s1323_s1, 2048, %s1127_s28, [#allocation6], %s1046_s15, %s1046_s15, %s1047_s16  }
  0x28   : > { %s914_s7 = scalar_lea.hbm %s1325_s3, 2048 }
  0x29   : > { %p915_p2 = scmp.ne.s32.totalorder %s1325_s3, %s914_s7  ;;  %p921_p10 = scmp.lt.u32.totalorder %s914_s7, %s1325_s3 }
  0x2b   : > { %p917_p1 = pnand %p915_p2, %p888_p13 }
  0x2d   : > { %p918_p6 = pneg %p917_p1 }
  0x2f   : > { %p923_p3 = pnand %p921_p10, %p918_p6 }
  0x31   : > { %926 = shalt.err (!%p923_p3)
}
  0x32   : > { %s927_s28 = scalar_lea.vmem %s1138_s6, 2048  ;;  %p935_p12 = scmp.lt.s32.totalorder %s1138_s6, %s1138_s6 }
  0x33   : > { %p928_p5 = scmp.ne.s32.totalorder %s1138_s6, %s927_s28  ;;  %p936_p0 = scmp.lt.s32.totalorder %s927_s28, %s927_s28 }
  0x35   : > { %p930_p7 = pnand %p928_p5, %p888_p13  ;;  %p937_p2 = por %p936_p0, %p935_p12 }
  0x37   : > { %p931_p9 = pneg %p930_p7 }
  0x39   : > { %p938_p1 = pnand %p937_p2, %p931_p9 }
  0x3b   : > { %941 = shalt.err (!%p938_p1)
}
  0x3c   : > { %s1048_s12 = smov 64   ;;  %s1049_s13 = smov 4  }
  0x3d   : > { %792 = dma.hbm_to_vmem [thread:$0]  (!%p1134_p11), %s1325_s3, 2048, %s1138_s6, [#allocation6], %s1048_s12, %s1048_s12, %s1049_s13  }
  0x3e   : > { %s1193_s16 = sadd.s32 1, %s1042_s21   ;;  %s29_s23 = sadd.s32 1, %s1038_s20 }
  0x3f   : > { %s26_s17 = ssub.s32 %s1042_s21, %s1193_s16  ;;  %p36_p6 = scmp.ne.s32.totalorder %s1038_s20, %s1034_s19 }
  0x40   : > { %p27_p13 = scmp.eq.s32.totalorder %s26_s17, 0  ;;  %p37_p10 = scmp.eq.s32.totalorder %s1042_s21, 0 }
  0x41   : > { %p1335_p5 = scmp.eq.s32.totalorder %s1104_s22, 1  ;;  %p803_p9 = scmp.lt.s32.totalorder %s1042_s21, 2 }
  0x42   : > { %s1202_s27 = scalar_select %p27_p13, %s1038_s20, %s29_s23  }
  0x43   : > { %p38_p3 = por %p37_p10, %p36_p6  ;;  %p1206_p7 = por %p1335_p5, %p36_p6 }
  0x44   : > { %s208_s29 = sand.u32 1, %s1038_s20   ;;  %s709_s6 = sshll.u32 %s1042_s21, 6 }
  0x45   : > { %s1336_s30 = scalar_select %p1206_p7, 1, 0 }
  0x46   : > { %s708_s7 = sshll.u32 %s208_s29, 2  ;;  %s1216_s10 = scalar_lea.hbm %s1322_s0, %s709_s6 }
  0x47   : > { %s212_s11 = scalar_lea.vmem [#allocation2], %s708_s7  ;;  %p1220_p11 = pnand %p803_p9, %p38_p3 }
  0x48   : > { %s219_s28 = sshll.u32 %s212_s11, 4  ;;  %s209_s13 = scalar_lea.sflag [#allocation3], %s208_s29  ;;  %s1218_s28 = int_to_ptr.vmem [resolvable:$true] %s219_s28 }
  0x49   : > { %s942_s14 = scalar_lea.hbm %s1216_s10, 64  ;;  %p944_p0 = pneg %p1220_p11 }
  0x4a   : > { %p943_p12 = scmp.ne.s32.totalorder %s1216_s10, %s942_s14  ;;  %s947_s23 = scalar_lea.hbm %s1322_s0, 128 }
  0x4b   : > { %p948_p13 = scmp.lt.u32.totalorder %s1216_s10, %s1322_s0  ;;  %p949_p6 = scmp.lt.u32.totalorder %s947_s23, %s942_s14 }
  0x4c   : > { %p945_p2 = pnand %p944_p0, %p943_p12  ;;  %p951_p3 = scmp.lt.u32.totalorder %s942_s14, %s1216_s10 }
  0x4d   : > { %p950_p10 = por %p949_p6, %p948_p13 }
  0x4e   : > { %p946_p1 = pneg %p945_p2 }
  0x4f   : > { %p952_p5 = por %p951_p3, %p950_p10 }
  0x51   : > { %p953_p9 = pnand %p952_p5, %p946_p1 }
  0x53   : > { %956 = shalt.err (!%p953_p9)
}
  0x54   : > { %s957_s29 = scalar_lea.vmem %s1218_s28, 64  ;;  %s1050_s8 = smov [#allocation2]  }
  0x55   : > { %p958_p12 = scmp.ne.s32.totalorder %s1218_s28, %s957_s29  ;;  %s962_s9 = sshll.u32 %s1050_s8, 4  ;;  %s963_s9 = int_to_ptr.vmem [resolvable:$false] %s962_s9 }
  0x56   : > { %s964_s11 = scalar_lea.vmem %s963_s9, 128  ;;  %p965_p4 = scmp.lt.s32.totalorder %s1218_s28, %s963_s9 }
  0x57   : > { %p960_p2 = pnand %p958_p12, %p944_p0  ;;  %p966_p13 = scmp.lt.s32.totalorder %s964_s11, %s957_s29 }
  0x59   : > { %p961_p7 = pneg %p960_p2  ;;  %p967_p6 = por %p966_p13, %p965_p4 }
  0x5b   : > { %p968_p10 = pnand %p967_p6, %p961_p7 }
  0x5d   : > { %971 = shalt.err (!%p968_p10)
}
  0x5e   : > { %796 = dma.hbm_to_vmem [thread:$0]  (!%p1220_p11), %s1216_s10, 64, %s1218_s28, %s209_s13  }
  0x5f   : > { %228 = sbr.rel (%p1123_p8) target bundleno = 590 (0x24e), region = 40  ;;  %s1252_s14 = sand.u32 (!%p1123_p8), 1, %s1034_s19  }
  0x60   : > { %s711_s15 = sshll.u32 (!%p1123_p8), %s1252_s14, 2  ;;  %s231_s17 = scalar_lea.sflag (!%p1123_p8), [#allocation3], %s1252_s14 }
  0x61   : > { %s1256_s23 = scalar_lea.vmem (!%p1123_p8), [#allocation2], %s711_s15  ;;  %p1338_p4 = scmp.ne.s32.totalorder (!%p1123_p8), %s1331_s24, 0 }
  0x66   : > { %1017 = dma.done.wait (%p1338_p4), %s231_s17, 64  }
  0x67   : > { %1019 = vsyncadd (%p1338_p4), %s231_s17, 4294967232  ;;  %p1339_p7 = scmp.eq.s32.totalorder %s1104_s22, 0 }
  0x69   : > { %1021 = dma.done.wait (%p1339_p7), [#allocation6], 4096   ;;  %p1340_p8 = pmov %p1339_p7 }
  0x6a   : > { %v1051_v0 = vmov 0   ;;  %v846_v1 = vld [vmem:[#allocation5 + $0x4] ss:$8 sps:$4 sm:$0xff]   ;;  %v848_v2 = vld [vmem:[#allocation5] ss:$8 sps:$4 sm:$0xff]   ;;  %v874_v15 = vld [vmem:[#allocation7 + $0x50] sm:$0xff]   ;;  %v289_v34 = vlaneseq }
  0x6b   : > { %1023 = vsyncadd (%p1340_p8), [#allocation6], 4294963200  ;;  %411 = vmatprep.mubr.bf16.mxu0 %v1051_v0  ;;  %379 = vmatprep.subr.bf16.mxu0 %v846_v1  ;;  %v849_v3 = vld [vmem:[#allocation5 + $0x14] ss:$8 sps:$4 sm:$0xff]   ;;  %v851_v4 = vld [vmem:[#allocation5 + $0x10] ss:$8 sps:$4 sm:$0xff]  }
  0x6c   : > { %380 = vmatpush1.bf16.msra.mxu0 %v848_v2  ;;  %v852_v5 = vld [vmem:[#allocation5 + $0x24] ss:$8 sps:$4 sm:$0xff]   ;;  %v854_v6 = vld [vmem:[#allocation5 + $0x20] ss:$8 sps:$4 sm:$0xff]   ;;  %v855_v7 = vld [vmem:[#allocation5 + $0x34] ss:$8 sps:$4 sm:$0xff]  }
  0x6d   : > { %381 = vmatprep.subr.bf16.mxu0 %v849_v3  ;;  %v857_v8 = vld [vmem:[#allocation5 + $0x30] ss:$8 sps:$4 sm:$0xff]   ;;  %v858_v9 = vld [vmem:[#allocation5 + $0x44] ss:$8 sps:$4 sm:$0xff]   ;;  %v860_v12 = vld [vmem:[#allocation5 + $0x40] ss:$8 sps:$4 sm:$0xff]  }
  0x6e   : > { %v870_v10 = vld [vmem:[#allocation7 + $0x40] sm:$0xff]   ;;  %v872_v13 = vld [vmem:[#allocation7 + $0x48] sm:$0xff]   ;;  %v861_v16 = vld [vmem:[#allocation5 + $0x54] ss:$8 sps:$4 sm:$0xff]   ;;  %v290_v35 = vshrl.u32 %v289_v34, 7  ;;  %s714_s10 = sshll.u32 %s1252_s14, 3 }
  0x6f   : > { %v871_v11 = vld [vmem:[#allocation7] sm:$0xff]   ;;  %752 = vmatprep.subr.bf16.mxu1 %v870_v10  ;;  %v873_v14 = vld [vmem:[#allocation7 + $0x8] sm:$0xff]   ;;  %v863_v17 = vld [vmem:[#allocation5 + $0x50] ss:$8 sps:$4 sm:$0xff]   ;;  %s749_s13 = sshll.u32 %s1104_s22, 7  ;;  %s268_s7 = scalar_lea.vmem [#allocation8], %s714_s10 }
  0x70   : > { %382 = vmatpush1.bf16.msra.mxu0 %v851_v4  ;;  %753 = vmatpush3.bf16.msra.mxu1 %v871_v11  ;;  %v875_v18 = vld [vmem:[#allocation7 + $0x10] sm:$0xff]   ;;  %v876_v19 = vld [vmem:[#allocation7 + $0x58] sm:$0xff]   ;;  %v864_v20 = vld [vmem:[#allocation5 + $0x64] ss:$8 sps:$4 sm:$0xff]   ;;  %v291_v36 = vsub.s32 0, %v290_v35  ;;  %v295_v38 = vsub.s32 1, %v290_v35  ;;  %s1278_s9 = scalar_lea.hbm %s1327_s5, %s749_s13 }
  0x71   : > { %383 = vmatprep.subr.bf16.mxu0 %v852_v5  ;;  %754 = vmatprep.subr.bf16.mxu1 %v872_v13  ;;  %v866_v21 = vld [vmem:[#allocation5 + $0x60] ss:$8 sps:$4 sm:$0xff]   ;;  %v867_v22 = vld [vmem:[#allocation5 + $0x74] ss:$8 sps:$4 sm:$0xff]   ;;  %v869_v26 = vld [vmem:[#allocation5 + $0x70] ss:$8 sps:$4 sm:$0xff]  }
  0x72   : > { %v877_v23 = vld [vmem:[#allocation7 + $0x18] sm:$0xff]   ;;  %v878_v24 = vld [vmem:[#allocation7 + $0x60] sm:$0xff]   ;;  %v880_v27 = vld [vmem:[#allocation7 + $0x68] sm:$0xff]   ;;  %s614_s6 = sshll.u32 %s268_s7, 4  ;;  %s601_s11 = scalar_lea.sflag [#allocation4], %s1252_s14  ;;  %s1280_s6 = int_to_ptr.vmem [resolvable:$true] %s614_s6 }
  0x73   : > { %v879_v25 = vld [vmem:[#allocation7 + $0x20] sm:$0xff]   ;;  %v881_v28 = vld [vmem:[#allocation7 + $0x28] sm:$0xff]   ;;  %v270_v29 = vld [vmem:[%s1256_s23] sm:$0xf]  ;;  %s972_s15 = scalar_lea.vmem %s1280_s6, 128  ;;  %p1341_p0 = scmp.ne.s32.totalorder %s1336_s30, 0 }
  0x74   : > { %384 = vmatpush1.bf16.msra.mxu0 %v854_v6  ;;  %755 = vmatpush3.bf16.msra.mxu1 %v873_v14  ;;  %v882_v30 = vld [vmem:[#allocation7 + $0x70] sm:$0xff]   ;;  %v884_v32 = vld [vmem:[#allocation7 + $0x78] sm:$0xff]   ;;  %p973_p11 = scmp.ne.s32.totalorder %s1280_s6, %s972_s15  ;;  %s1052_s22 = smov [#allocation8]  }
  0x75   : > { %385 = vmatprep.subr.bf16.mxu0 %v855_v7  ;;  %756 = vmatprep.subr.bf16.mxu1 %v874_v15  ;;  %v883_v31 = vld [vmem:[#allocation7 + $0x30] sm:$0xff]   ;;  %v885_v33 = vld [vmem:[#allocation7 + $0x38] sm:$0xff]   ;;  %s976_s17 = sshll.u32 %s1052_s22, 4  ;;  %s977_s17 = int_to_ptr.vmem [resolvable:$false] %s976_s17 }
  0x76   : > { %v287_v37 = vld [vmem:[%s1324_s2] sm:$0x3]  ;;  %p974_p1 = pnand %p973_p11, %p1341_p0  ;;  %s978_s23 = scalar_lea.vmem %s977_s17, 256 }
  0x77   : > { %v292_v39 = vrot.slane %v287_v37, %v291_v36  ;;  %v296_v40 = vrot.slane %v287_v37, %v295_v38  ;;  %v731_v52 = vld [vmem:[%s1326_s4] ss:$0 sm:$0xff]  ;;  %p979_p5 = scmp.lt.s32.totalorder %s1280_s6, %s977_s17  ;;  %p980_p9 = scmp.lt.s32.totalorder %s978_s23, %s972_s15 }
  0x78   : > { %386 = vmatpush1.bf16.msra.mxu0 %v857_v8  ;;  %757 = vmatpush3.bf16.msra.mxu1 %v875_v18  ;;  %p975_p3 = pneg %p974_p1 }
  0x79   : > { %387 = vmatprep.subr.bf16.mxu0 %v858_v9  ;;  %758 = vmatprep.subr.bf16.mxu1 %v876_v19  ;;  %p981_p12 = por %p980_p9, %p979_p5 }
  0x7b   : > { %p982_p2 = pnand %p981_p12, %p975_p3 }
  0x7c   : > { %388 = vmatpush1.bf16.msra.mxu0 %v860_v12  ;;  %759 = vmatpush3.bf16.msra.mxu1 %v877_v23 }
  0x7d   : > { %389 = vmatprep.subr.bf16.mxu0 %v861_v16  ;;  %760 = vmatprep.subr.bf16.mxu1 %v878_v24 }
  0x80   : > { %390 = vmatpush1.bf16.msra.mxu0 %v863_v17  ;;  %761 = vmatpush3.bf16.msra.mxu1 %v879_v25 }
  0x81   : > { %391 = vmatprep.subr.bf16.mxu0 %v864_v20  ;;  %762 = vmatprep.subr.bf16.mxu1 %v880_v27 }
  0x84   : > { %392 = vmatpush1.bf16.msra.mxu0 %v866_v21  ;;  %763 = vmatpush3.bf16.msra.mxu1 %v881_v28 }
  0x85   : > { %393 = vmatprep.subr.bf16.mxu0 %v867_v22  ;;  %764 = vmatprep.subr.bf16.mxu1 %v882_v30 }
  0x88   : > { %394 = vmatpush1.bf16.msra.mxu0 %v869_v26  ;;  %765 = vmatpush3.bf16.msra.mxu1 %v883_v31 }
  0x89   : > { %766 = vmatprep.subr.bf16.mxu1 %v884_v32 }
  0x8b   : > { %412 = vmatmul.mubr.bf16.vlgmr.msra.gmra.mrb[0].mxu0 %v270_v29 }
  0x8c   : > { %767 = vmatpush3.bf16.msra.mxu1 %v885_v33 }
 0x15e   : > { %v413_v41 = vpop.f32.mrb[0].mxu0 }
 0x15f   : > { %v414_v42 = vadd.f32 %v413_v41, %v292_v39  ;;  %v415_v43 = vpop.f32.mrb[1].mxu0 }
 0x160   : > { %v416_v44 = vadd.f32 %v415_v43, %v296_v40  ;;  %v417_v45 = vpop.f32.mrb[2].mxu0 }
 0x161   : > { %v420_v46 = vmax.f32 %v414_v42, 0.0  ;;  %v418_v47 = vpop.f32.mrb[3].mxu0 }
 0x162   : > { %v421_v48 = vmax.f32 %v416_v44, 0.0 }
 0x163   : > { %v422_v50 = vpack.c.bf16 %v420_v46, %v420_v46 }
 0x164   : > { %v423_v49 = vpack.c.bf16 %v421_v48, %v421_v48 }
 0x166   : > { %591 = vmatprep.mubr.bf16.mxu1 %v423_v49 }
 0x167   : > { %592 = vmatmul.mubr.bf16.vlgmr.msra.gmra.mrb[0].mxu1 %v422_v50 }
 0x23a   : > { %v768_v51 = vpop.f32.mrb[0].mxu1 }
 0x23b   : > { %v769_v53 = vpop.f32.mrb[1].mxu1 }
 0x23c   : > { %v770_v54 = vadd.f32 %v769_v53, %v768_v51  ;;  %v771_v55 = vpop.f32.mrb[2].mxu1 }
 0x23d   : > { %v772_v56 = vpop.f32.mrb[3].mxu1 }
 0x23e   : > { %v594_v57 = vadd.f32 %v770_v54, %v731_v52 }
 0x240   : > { %599 = vst [vmem:[%s268_s7] sm:$0xff] %v594_v57 }
 0x241   : > { %985 = shalt.err (!%p982_p2)
}
 0x242   : > { %s986_s14 = scalar_lea.hbm %s1278_s9, 128  ;;  %s990_s10 = scalar_lea.hbm %s1327_s5, 256 }
 0x243   : > { %p987_p13 = scmp.ne.s32.totalorder %s1278_s9, %s986_s14  ;;  %p991_p4 = scmp.lt.u32.totalorder %s1278_s9, %s1327_s5 }
 0x244   : > { %p992_p7 = scmp.lt.u32.totalorder %s990_s10, %s986_s14  ;;  %p994_p11 = scmp.lt.u32.totalorder %s986_s14, %s1278_s9 }
 0x245   : > { %p988_p6 = pnand %p987_p13, %p1341_p0 }
 0x246   : > { %p993_p8 = por %p992_p7, %p991_p4 }
 0x247   : > { %p989_p10 = pneg %p988_p6 }
 0x248   : > { %p995_p1 = por %p994_p11, %p993_p8 }
 0x24a   : > { %p996_p3 = pnand %p995_p1, %p989_p10 }
 0x24c   : > { %999 = shalt.err (!%p996_p3)
}
 0x24d   : > { %784 = dma.vmem_to_hbm [thread:$0]  (%p1341_p0), %s1280_s6, 128, %s1278_s9, %s601_s11  }
 0x24e PF: > { %s626_s13 = sand.u32 1, %s1030_s18   ;;  %p1342_p5 = scmp.ne.s32.totalorder %s1332_s25, 0 }
 0x24f   : > { %p1343_p9 = scmp.ge.s32.totalorder %s1042_s21, 2  ;;  %s627_s7 = scalar_lea.sflag [#allocation4], %s626_s13 }
 0x251   : > { %p798_p12 = pnand %p1343_p9, %p1342_p5 }
 0x253   : > { %1025 = dma.done.wait (!%p798_p12), %s627_s7, 128  }
 0x254   : > { %1027 = vsyncadd (!%p798_p12), %s627_s7, 4294967168  ;;  %p19_p2 = scmp.ge.s32.totalorder %s1193_s16, 4   ;;  %s1344_s18 = smov %s1034_s19 }
 0x255   : > { %s1345_s19 = smov %s1038_s20  ;;  %s1346_s20 = smov %s1202_s27 }
 0x256   : > { %s1347_s21 = smov %s1193_s16  ;;  %21 = sbr.rel (!%p19_p2) target bundleno = 6 (0x6), region = 93 }
 0x25d   :  { %632 = vsyncpa [#allocation3], 1 }
 0x25e   :  { %634 = vsyncpa [#allocation3 + $0x1], 1 }
 0x25f   :  { %635 = vsyncpa [#allocation6], 1 }
 0x260   :  { %636 = vsyncpa [#allocation4], 1 }
 0x261   :  { %638 = vsyncpa [#allocation4 + $0x1], 1 }

</bundles_post_ra>
